<compile_context>
chip_gen: v7x
topology: tpu7x:2x2x1
jax: 0.10.0
libtpu: 0.0.40
codegen_flags: <defaults>
</compile_context>

<pallas_src>
import jax
import jax.numpy as jnp
from jax.experimental import pallas as pl
from jax.experimental.pallas import tpu as pltpu

LANE = 128


def _round_up(x, m):
    return ((x + m - 1) // m) * m


def _sublane(dtype):
    # Sublane packing granularity: 8 rows for 32-bit, 16 for 16-bit, etc.
    return max(8, 32 // jnp.dtype(dtype).itemsize)


# --------------------------------------------------------------------------
# Kernels
# --------------------------------------------------------------------------

def _td_linear_kernel(x_ref, w_ref, b_ref, o_ref):
    # x_ref: (TM, H) tile; w_ref: (H, O_pad) resident; b_ref: (1, O_pad) f32
    # resident; o_ref: (TM, O_pad).  Bias is added to the f32 accumulator.
    acc = jnp.dot(x_ref[...], w_ref[...], preferred_element_type=jnp.float32)
    o_ref[...] = (acc + b_ref[...]).astype(o_ref.dtype)


def _td_linear_ktiled_kernel(x_ref, w_ref, b_ref, o_ref, acc_ref):
    # K-tiled fallback: x_ref (TM, TK), w_ref (TK, O_pad), acc_ref (TM, O_pad)
    # f32 scratch persisting across the K grid axis.
    k = pl.program_id(1)

    @pl.when(k == 0)
    def _init():
        acc_ref[...] = jnp.zeros_like(acc_ref)

    acc_ref[...] += jnp.dot(x_ref[...], w_ref[...],
                            preferred_element_type=jnp.float32)

    @pl.when(k == pl.num_programs(1) - 1)
    def _finalize():
        o_ref[...] = (acc_ref[...] + b_ref[...]).astype(o_ref.dtype)


# --------------------------------------------------------------------------
# One-time parameter preparation (model init), per-call forward
# --------------------------------------------------------------------------

def prepare_time_distributed_linear(
        w, b, *,
        compute_dtype=None,
        vmem_budget_bytes=48 * 1024 * 1024,     # ~48 MiB plan; fits v7x 64 MiB
        max_resident_weight_bytes=16 * 1024 * 1024,
        block_k=512,
        max_tm=1024,
        lane_pad=LANE):                          # use 256 on v6e/v7x if MXU-bound
    """Pad / cast nn.Linear parameters once (at init) and build a kernel plan.

    w: (H, O)  -- transpose of PyTorch nn.Linear weight (O, H)
    b: (O,)
    compute_dtype: dtype x and w are fed to the MXU in (e.g. jnp.bfloat16).
        Accumulation and the bias add are always f32.
    """
    h, o = w.shape
    cdt = jnp.dtype(compute_dtype) if compute_dtype is not None else jnp.dtype(w.dtype)
    c_it = cdt.itemsize
    o_pad = _round_up(o, lane_pad)

    # Decide between the resident-weight fast path and the K-tiled fallback.
    resident_w_bytes = h * o_pad * c_it
    k_tiled = resident_w_bytes > max_resident_weight_bytes
    if k_tiled:
        tk = min(_round_up(block_k, LANE), _round_up(h, LANE))
        h_pad = _round_up(h, tk)
    else:
        tk = 0
        h_pad = h

    # Pad / cast parameters ONCE (not per forward call).
    w_k = w.astype(cdt)
    if h_pad != h or o_pad != o:
        w_k = jnp.pad(w_k, ((0, h_pad - h), (0, o_pad - o)))
    # Bias stays f32 so the bias add matches PyTorch's f32 precision even on
    # the bf16 compute path.
    b_k = jnp.pad(b.astype(jnp.float32), (0, o_pad - o)).reshape(1, o_pad)

    # Derive the row tile tm from the VMEM budget (outputs planned as f32,
    # the widest dtype emitted).
    out_it = 4
    sub = _sublane(cdt)
    if k_tiled:
        # 2x (tm,tk) x blocks + 2x (tk,o_pad) w blocks + bias + f32 acc
        # scratch + 2x (tm,o_pad) out blocks.
        fixed = 2 * tk * o_pad * c_it + o_pad * 4
        per_row = 2 * tk * c_it + o_pad * 4 + 2 * o_pad * out_it
        # TODO(synk): very large O would also need an N (output-column) tile.
    else:
        # resident weight + bias + 2x (tm,h) x blocks + 2x (tm,o_pad) out.
        fixed = h_pad * o_pad * c_it + o_pad * 4
        per_row = 2 * h_pad * c_it + 2 * o_pad * out_it
    tm = (vmem_budget_bytes - fixed) // per_row
    tm = max(sub, min(max_tm, (tm // sub) * sub))

    return dict(w=w_k, b=b_k, h=h, o=o, h_pad=h_pad, o_pad=o_pad,
                k_tiled=k_tiled, tk=tk, tm=int(tm), compute_dtype=cdt,
                vmem_limit_bytes=int(vmem_budget_bytes))


def time_distributed_linear(x, params, *, return_padded=False):
    """Equivalent of TimeDistributed(nn.Linear(H, O))(x).

    x: (T, N, H); returns (T, N, O) (or (T, N, O_pad) if return_padded).
    """
    t, n, h = x.shape
    assert h == params["h"], "input feature dim does not match prepared params"
    rows = t * n
    o, o_pad, h_pad = params["o"], params["o_pad"], params["h_pad"]
    cdt = params["compute_dtype"]
    out_dtype = x.dtype

    # Collapse (T, N, H) -> (T*N, H): the TimeDistributed .view() glue.
    x2d = x.reshape(rows, h).astype(cdt)
    if h_pad != h:
        # Zero-pad the contraction dim (K-tiled path only) so partial K
        # blocks never feed garbage into the accumulator.
        x2d = jnp.pad(x2d, ((0, 0), (0, h_pad - h)))

    sub = _sublane(cdt)
    tm = min(params["tm"], _round_up(rows, sub))
    grid_m = pl.cdiv(rows, tm)

    c_it = cdt.itemsize
    cost = pl.CostEstimate(
        flops=2 * rows * h_pad * o_pad,
        bytes_accessed=int(rows * h_pad * c_it + h_pad * o_pad * c_it
                           + o_pad * 4
                           + rows * o_pad * jnp.dtype(out_dtype).itemsize),
        transcendentals=0,
    )

    if not params["k_tiled"]:
        grid = (grid_m,)
        in_specs = [
            # x: one row tile per grid step (auto double-buffered pipeline).
            pl.BlockSpec((tm, h_pad), lambda i: (i, 0)),
            # Weight / bias: whole array resident in VMEM, single buffer,
            # never re-fetched.
            pl.BlockSpec(memory_space=pltpu.MemorySpace.VMEM),
            pl.BlockSpec(memory_space=pltpu.MemorySpace.VMEM),
        ]
        out_specs = pl.BlockSpec((tm, o_pad), lambda i: (i, 0))
        scratch = []
        kernel = _td_linear_kernel
        # TODO(synk): verify on v7x that "parallel" shards row tiles across
        # both TensorCores; switch to pltpu.CORE_PARALLEL if it does not.
        semantics = ("parallel",)
    else:
        tk = params["tk"]
        grid = (grid_m, h_pad // tk)
        in_specs = [
            pl.BlockSpec((tm, tk), lambda i, k: (i, k)),
            pl.BlockSpec((tk, o_pad), lambda i, k: (k, 0)),
            pl.BlockSpec(memory_space=pltpu.MemorySpace.VMEM),
        ]
        out_specs = pl.BlockSpec((tm, o_pad), lambda i, k: (i, 0))
        scratch = [pltpu.VMEM((tm, o_pad), jnp.float32)]
        kernel = _td_linear_ktiled_kernel
        semantics = ("parallel", "arbitrary")

    out2d = pl.pallas_call(
        kernel,
        out_shape=jax.ShapeDtypeStruct((rows, o_pad), out_dtype),
        grid_spec=pltpu.PrefetchScalarGridSpec(
            num_scalar_prefetch=0,
            grid=grid,
            in_specs=in_specs,
            out_specs=out_specs,
            scratch_shapes=scratch,
        ),
        compiler_params=pltpu.CompilerParams(
            dimension_semantics=semantics,
            vmem_limit_bytes=params["vmem_limit_bytes"],
        ),
        cost_estimate=cost,
    )(x2d, params["w"], params["b"])

    # Restore (T, N, -1), matching x.view(t, n, -1).
    out3d = out2d.reshape(t, n, o_pad)
    if return_padded or o_pad == o:
        return out3d
    # Under jit this slice typically fuses into the consumer; pass
    # return_padded=True to keep the lane-padded layout and skip it entirely.
    return out3d[..., :o]


if __name__ == "__main__":
    # Shapes consistent with TimeDistributed(nn.Linear): T timesteps, N batch,
    # H input features, O output features.
    key = jax.random.PRNGKey(0)

    # --- 1. Default (f32) fast path ----------------------------------------
    T, N, H, O = 8, 2, 32, 64
    kx, kw, kb = jax.random.split(key, 3)
    x = jax.random.normal(kx, (T, N, H), dtype=jnp.float32)
    w = jax.random.normal(kw, (H, O), dtype=jnp.float32) * 0.1   # (H, O) = Linear.weight.T
    b = jax.random.normal(kb, (O,), dtype=jnp.float32) * 0.1

    params = prepare_time_distributed_linear(w, b)
    out = jax.block_until_ready(time_distributed_linear(x, params))
    ref = (x.reshape(T * N, H) @ w + b).reshape(T, N, O)
    assert out.shape == (T, N, O)
    assert jnp.allclose(out, ref, atol=1e-5, rtol=1e-5)

    # --- 2. bf16 compute path (f32 accumulate + f32 bias) -------------------
    params_bf16 = prepare_time_distributed_linear(w, b, compute_dtype=jnp.bfloat16)
    out_bf16 = jax.block_until_ready(time_distributed_linear(x, params_bf16))
    assert out_bf16.shape == (T, N, O)
    assert jnp.allclose(out_bf16, ref, atol=3e-2, rtol=3e-2)

    # --- 3. K-tiled fallback (forced here; used when the resident weight
    #         would not fit VMEM, mandatory for large layers on v7x) ---------
    T2, N2, H2, O2 = 4, 2, 256, 64
    kx2, kw2, kb2 = jax.random.split(jax.random.PRNGKey(1), 3)
    x2 = jax.random.normal(kx2, (T2, N2, H2), dtype=jnp.float32)
    w2 = jax.random.normal(kw2, (H2, O2), dtype=jnp.float32) * 0.1
    b2 = jax.random.normal(kb2, (O2,), dtype=jnp.float32) * 0.1
    params_kt = prepare_time_distributed_linear(
        w2, b2, max_resident_weight_bytes=0, block_k=128)
    assert params_kt["k_tiled"]
    out2 = jax.block_until_ready(time_distributed_linear(x2, params_kt))
    ref2 = (x2.reshape(T2 * N2, H2) @ w2 + b2).reshape(T2, N2, O2)
    assert out2.shape == (T2, N2, O2)
    assert jnp.allclose(out2, ref2, atol=1e-4, rtol=1e-4)

    print("KERNEL_OK")
</pallas_src>

<mosaic_0001>
module attributes {stable_mosaic.version = 11 : i64} {
  func.func @_td_linear_kernel(%arg0: i32, %arg1: memref<16x32xf32, #tpu.memory_space<vmem>>, %arg2: memref<32x128xf32, #tpu.memory_space<vmem>>, %arg3: memref<1x128xf32, #tpu.memory_space<vmem>>, %arg4: memref<16x128xf32, #tpu.memory_space<vmem>>) attributes {dimension_semantics = [#tpu.dimension_semantics<parallel>], iteration_bounds = array<i64: 1>, scalar_prefetch = 0 : i64, scratch_operands = 0 : i64, tpu.core_type = #tpu.core_type<tc>, window_params = [{transform_indices = @transform_0, window_bounds = array<i64: 16, 32>}, {pipeline_mode = #tpu.pipeline_mode<synchronous>, transform_indices = @transform_1, window_bounds = array<i64: 32, 128>}, {pipeline_mode = #tpu.pipeline_mode<synchronous>, transform_indices = @transform_2, window_bounds = array<i64: 1, 128>}, {transform_indices = @transform_3, window_bounds = array<i64: 16, 128>}]} {
    %c0 = arith.constant 0 : index
    %c0_0 = arith.constant 0 : index
    %0 = vector.load %arg1[%c0, %c0_0] : memref<16x32xf32, #tpu.memory_space<vmem>>, vector<16x32xf32>
    %c0_1 = arith.constant 0 : index
    %c0_2 = arith.constant 0 : index
    %1 = vector.load %arg2[%c0_1, %c0_2] : memref<32x128xf32, #tpu.memory_space<vmem>>, vector<32x128xf32>
    %cst = arith.constant dense<0.000000e+00> : vector<16x128xf32>
    %2 = tpu.matmul %0, %1, %cst {dimension_numbers = #tpu.dot_dimension_numbers<[1], [0], [0], [1], [0, 0, 1, 1], [], []>} : vector<16x32xf32>, vector<32x128xf32>, vector<16x128xf32> -> vector<16x128xf32>
    %c0_3 = arith.constant 0 : index
    %c0_4 = arith.constant 0 : index
    %3 = vector.load %arg3[%c0_3, %c0_4] : memref<1x128xf32, #tpu.memory_space<vmem>>, vector<1x128xf32>
    %4 = vector.broadcast %3 : vector<1x128xf32> to vector<16x128xf32>
    %5 = arith.addf %2, %4 : vector<16x128xf32>
    %c0_5 = arith.constant 0 : index
    %c0_6 = arith.constant 0 : index
    %6 = vector.load %arg4[%c0_5, %c0_6] : memref<16x128xf32, #tpu.memory_space<vmem>>, vector<16x128xf32>
    tpu.vector_store %arg4[%c0_5, %c0_6], %5 {strides = array<i32>} : memref<16x128xf32, #tpu.memory_space<vmem>>, vector<16x128xf32>,
    return
  }
  func.func @transform_0(%arg0: i32) -> (i32, i32) {
    %c0_i32 = arith.constant 0 : i32
    %c0_i32_0 = arith.constant 0 : i32
    return %arg0, %c0_i32 : i32, i32
  }
  func.func @transform_1(%arg0: i32) -> (i32, i32) {
    %c0_i32 = arith.constant 0 : i32
    %c0_i32_0 = arith.constant 0 : i32
    %c0_i32_1 = arith.constant 0 : i32
    return %c0_i32, %c0_i32_0 : i32, i32
  }
  func.func @transform_2(%arg0: i32) -> (i32, i32) {
    %c0_i32 = arith.constant 0 : i32
    %c0_i32_0 = arith.constant 0 : i32
    %c0_i32_1 = arith.constant 0 : i32
    return %c0_i32, %c0_i32_0 : i32, i32
  }
  func.func @transform_3(%arg0: i32) -> (i32, i32) {
    %c0_i32 = arith.constant 0 : i32
    %c0_i32_0 = arith.constant 0 : i32
    return %arg0, %c0_i32 : i32, i32
  }
}

</mosaic_0001>

<bundles_post_ra>
// kernel: tpu_custom_call.1
= control target key start
LH: loop header
LB: loop body
LE: loop exit
PB: predicated region body
PF: predicated region fallthrough
CT: control target
= control target key end

     0   :  { %8 = vsyncpa [#allocation3], 0  ;;  %s336_s0 = inlined_call_operand.hbm [shape: f32[16,32], index: 0, kind: input, shape index: {}]   ;;  %s337_s1 = inlined_call_operand.hbm [shape: f32[32,128], index: 1, kind: input, shape index: {}]   ;;  %s338_s2 = inlined_call_operand.vmem [shape: f32[1,128], index: 2, kind: input, shape index: {}]   ;;  %s339_s3 = inlined_call_operand.hbm [shape: f32[16,128], index: 3, kind: output, shape index: {}]  }
   0x1   :  { %9 = vsyncpa [#allocation6], 0 }
   0x2   :  { %10 = vsyncpa [#allocation4], 0  ;;  %s263_s12 = smov [#allocation2]   ;;  %s191_s16 = scalar_lea.hbm %s336_s0, 256 }
   0x3   :  { %s16_s13 = sshll.u32 %s263_s12, 4  ;;  %p192_p0 = scmp.ne.s32.totalorder %s336_s0, %s191_s16  ;;  %s17_s13 = int_to_ptr.vmem [resolvable:$true] %s16_s13 }
   0x4   :  { %p195_p1 = scmp.lt.u32.totalorder %s191_s16, %s336_s0 }
   0x6   :  { %p197_p2 = pnand %p195_p1, %p192_p0 }
   0x8   :  { %200 = shalt.err (!%p197_p2)
}
   0x9   :  { %s201_s21 = scalar_lea.vmem %s17_s13, 256  ;;  %p206_p4 = scmp.lt.s32.totalorder %s17_s13, %s17_s13 }
   0xa   :  { %p202_p3 = scmp.ne.s32.totalorder %s17_s13, %s201_s21  ;;  %p207_p5 = scmp.lt.s32.totalorder %s201_s21, %s201_s21 }
   0xc   :  { %p208_p6 = por %p207_p5, %p206_p4 }
   0xe   :  { %p209_p7 = pnand %p208_p6, %p202_p3 }
  0x10   :  { %212 = shalt.err (!%p209_p7)
}
  0x11   :  { %s264_s22 = smov 128   ;;  %s265_s23 = smov 8  }
  0x12   :  { %22 = dma.hbm_to_vmem [thread:$0]  %s336_s0, 256, %s17_s13, [#allocation3], %s264_s22, %s264_s22, %s265_s23  }
  0x13   :  { %s266_s26 = smov [#allocation5]   ;;  %s213_s30 = scalar_lea.hbm %s337_s1, 512 }
  0x14   :  { %s28_s27 = sshll.u32 %s266_s26, 4  ;;  %p214_p8 = scmp.ne.s32.totalorder %s337_s1, %s213_s30  ;;  %s29_s27 = int_to_ptr.vmem [resolvable:$true] %s28_s27 }
  0x15   :  { %p217_p9 = scmp.lt.u32.totalorder %s213_s30, %s337_s1 }
  0x17   :  { %p219_p10 = pnand %p217_p9, %p214_p8 }
  0x19   :  { %222 = shalt.err (!%p219_p10)
}
  0x1a   :  { %s223_s8 = scalar_lea.vmem %s29_s27, 512  ;;  %p228_p12 = scmp.lt.s32.totalorder %s29_s27, %s29_s27 }
  0x1b   :  { %p224_p11 = scmp.ne.s32.totalorder %s29_s27, %s223_s8  ;;  %p229_p13 = scmp.lt.s32.totalorder %s223_s8, %s223_s8 }
  0x1d   :  { %p230_p0 = por %p229_p13, %p228_p12 }
  0x1f   :  { %p231_p1 = pnand %p230_p0, %p224_p11 }
  0x21   :  { %234 = shalt.err (!%p231_p1)
}
  0x22   :  { %34 = dma.hbm_to_vmem [thread:$0]  %s337_s1, 512, %s29_s27, [#allocation6], %s264_s22, %s264_s22, %s265_s23  }
  0x23   :  { %257 = dma.done.wait [#allocation3], 256  }
  0x24   :  { %258 = vsyncadd [#allocation3], 4294967040 }
  0x25   :  { %259 = dma.done.wait [#allocation6], 512  }
  0x26   :  { %260 = vsyncadd [#allocation6], 4294966784  ;;  %vm56_vm0 = vcmask 261120   ;;  %v45_v0 = vld [vmem:[#allocation5] sm:$0xff]  ;;  %v46_v1 = vld [vmem:[#allocation5 + $0x8] sm:$0xff]  ;;  %s267_s11 = smov [#allocation7]  }
  0x27   :  { %v47_v2 = vld [vmem:[#allocation5 + $0x10] sm:$0xff]  ;;  %v178_v3 = vpack.c.bf16 %v46_v1, %v45_v0  ;;  %v48_v4 = vld [vmem:[#allocation5 + $0x18] sm:$0xff]  ;;  %s145_s12 = sshll.u32 %s267_s11, 4  ;;  %s146_s12 = int_to_ptr.vmem [resolvable:$true] %s145_s12 }
  0x28   :  { %v43_v5 = vld [vmem:[#allocation2] sm:$0xff]  ;;  %v182_v6 = vpack.c.bf16 %v48_v4, %v47_v2  ;;  %v44_v7 = vld [vmem:[#allocation2 + $0x8] sm:$0xff]  ;;  %s235_s13 = scalar_lea.vmem %s146_s12, 256  ;;  %p240_p3 = scmp.lt.s32.totalorder %s146_s12, %s146_s12 }
  0x29   :  { %175 = vmatprep.mubr.msk.f32.mxu0 %vm56_vm0, %v43_v5  ;;  %179 = vmatprep.subr.bf16.mxu0 %v178_v3  ;;  %v158_v8 = vld [vmem:[%s338_s2] ss:$0 sm:$0xff]  ;;  %p236_p2 = scmp.ne.s32.totalorder %s146_s12, %s235_s13  ;;  %p241_p4 = scmp.lt.s32.totalorder %s235_s13, %s235_s13 }
  0x2a   :  { %181 = vmatpush3.bf16.msra.mxu0 %v178_v3 }
  0x2b   :  { %183 = vmatprep.subr.bf16.mxu0 %v182_v6  ;;  %p242_p5 = por %p241_p4, %p240_p3 }
  0x2d   :  { %p243_p6 = pnand %p242_p5, %p236_p2 }
  0x2e   :  { %185 = vmatpush3.bf16.msra.mxu0 %v182_v6 }
  0x31   :  { %176 = vmatmul.mubr.msk.f32.vlgmr.msra.gmra.mrb[0].mxu0 %vm56_vm0, %v44_v7 }
 0x104   :  { %v177_v9 = vpop.f32.mrb[0].mxu0 }
 0x105   :  { %v135_v10 = vadd.f32 %v177_v9, %v158_v8  ;;  %v129_v11 = vpop.f32.mrb[1].mxu0 }
 0x106   :  { %v130_v12 = vadd.f32 %v158_v8, %v129_v11 }
 0x107   :  { %139 = vst [vmem:[#allocation7 + $0x8] sm:$0xff] %v135_v10 }
 0x108   :  { %138 = vst [vmem:[#allocation7] sm:$0xff] %v130_v12 }
 0x109   :  { %246 = shalt.err (!%p243_p6)
}
 0x10a   :  { %s247_s2 = scalar_lea.hbm %s339_s3, 256 }
 0x10b   :  { %p248_p7 = scmp.ne.s32.totalorder %s339_s3, %s247_s2  ;;  %p251_p8 = scmp.lt.u32.totalorder %s247_s2, %s339_s3 }
 0x10d   :  { %p253_p9 = pnand %p251_p8, %p248_p7 }
 0x10f   :  { %256 = shalt.err (!%p253_p9)
}
 0x110   :  { %151 = dma.vmem_to_hbm [thread:$0]  %s146_s12, 256, %s339_s3, [#allocation4], %s264_s22, %s264_s22, %s265_s23  }
 0x111   :  { %261 = dma.done.wait [#allocation4], 256  }
 0x112   :  { %262 = vsyncadd [#allocation4], 4294967040 }
 0x113   :  { %155 = vsyncpa [#allocation3], 1 }
 0x114   :  { %156 = vsyncpa [#allocation6], 1 }
 0x115   :  { %157 = vsyncpa [#allocation4], 1 }

</bundles_post_ra>
